<compile_context>
chip_gen: v6e
topology: v6e:2x2x1
jax: 0.10.0
libtpu: 0.0.40
codegen_flags: <defaults>
</compile_context>

<pallas_src>
import jax
import jax.numpy as jnp
from jax.experimental import pallas as pl
from jax.experimental.pallas import tpu as pltpu


def linear_relu_kernel(x_ref, w_ref, b_ref, o_ref):
    # x_ref: (B, K) f32, w_ref: (K, TN) bf16, b_ref: (1, TN) f32, o_ref: (B, TN) f32
    # Cast only the tiny activation; feed the bf16 weight tile straight to the
    # MXU and accumulate in f32 (no full-tile f32 weight temp, no spills).
    x_bf16 = x_ref[...].astype(jnp.bfloat16)
    acc = jnp.dot(x_bf16, w_ref[...], preferred_element_type=jnp.float32)
    acc = acc + b_ref[...]                     # broadcast bias over batch
    o_ref[...] = jnp.maximum(acc, 0.0).astype(o_ref.dtype)


def linear_relu(x, w_kn, bias, *, n_shards=1):
    """x: (B, K) f32, w_kn: (K, N) bf16 (already transposed, stored once),
    bias: (N,) f32. n_shards optionally splits N across TensorCores."""
    B, K = x.shape
    Kw, N = w_kn.shape
    assert Kw == K and N % n_shards == 0
    tn = N // n_shards
    assert n_shards == 1 or tn % 128 == 0
    b2d = bias.reshape(1, N)

    cost = pl.CostEstimate(
        flops=2 * B * K * N,
        transcendentals=0,
        bytes_accessed=(x.size * x.dtype.itemsize
                        + w_kn.size * w_kn.dtype.itemsize
                        + bias.size * bias.dtype.itemsize
                        + B * N * 4),
    )

    return pl.pallas_call(
        linear_relu_kernel,
        out_shape=jax.ShapeDtypeStruct((B, N), jnp.float32),
        grid_spec=pltpu.PrefetchScalarGridSpec(
            num_scalar_prefetch=0,
            grid=(n_shards,),
            in_specs=[
                pl.BlockSpec((B, K), lambda i: (0, 0)),    # x: whole row block
                pl.BlockSpec((K, tn), lambda i: (0, i)),   # weight: N-shard
                pl.BlockSpec((1, tn), lambda i: (0, i)),   # bias:   N-shard
            ],
            out_specs=pl.BlockSpec((B, tn), lambda i: (0, i)),
        ),
        compiler_params=pltpu.CompilerParams(
            dimension_semantics=("parallel",),
        ),
        cost_estimate=cost,
    )(x, w_kn, b2d)


if __name__ == "__main__":
    key = jax.random.PRNGKey(0)
    kx, kw, kb = jax.random.split(key, 3)

    B, K, N = 1, 1152, 256          # matches x1 = torch.randn(1, 1152)

    x = jax.random.normal(kx, (B, K), dtype=jnp.float32)
    # Deterministic param init (mimicking nn.Linear uniform(-1/sqrt(K), 1/sqrt(K))).
    bound = 1.0 / jnp.sqrt(jnp.float32(K))
    # Stored directly in (K, N) layout — no per-call transpose in the hot path.
    weight_kn_f32 = jax.random.uniform(kw, (K, N), minval=-bound, maxval=bound,
                                       dtype=jnp.float32)
    bias = jax.random.uniform(kb, (N,), minval=-bound, maxval=bound,
                              dtype=jnp.float32)
    # One-time offline cast: weight streamed from HBM in bf16.
    weight_kn_bf16 = weight_kn_f32.astype(jnp.bfloat16)

    # Per review: the 2-TC N split on v7x is likely a wash; default to 1.
    # (Set n_shards=2 and benchmark min-of-N on v7x if desired.)
    out = linear_relu(x, weight_kn_bf16, bias, n_shards=1)
    out = jax.block_until_ready(out)

    # Reference with the SAME bf16-quantized operands (weight and activation),
    # upcast to f32 and reduced at highest precision.
    w_ref = weight_kn_bf16.astype(jnp.float32)
    x_ref = x.astype(jnp.bfloat16).astype(jnp.float32)
    ref = jnp.maximum(
        jnp.dot(x_ref, w_ref, precision=jax.lax.Precision.HIGHEST) + bias, 0.0)

    assert out.shape == (B, N)
    assert jnp.allclose(out, ref, atol=2e-3, rtol=2e-3)

    print("KERNEL_OK")
</pallas_src>

<mosaic_0001>
module attributes {stable_mosaic.version = 11 : i64} {
  func.func @linear_relu_kernel(%arg0: i32, %arg1: memref<1x1152xf32, #tpu.memory_space<vmem>>, %arg2: memref<1152x256xbf16, #tpu.memory_space<vmem>>, %arg3: memref<1x256xf32, #tpu.memory_space<vmem>>, %arg4: memref<1x256xf32, #tpu.memory_space<vmem>>) attributes {dimension_semantics = [#tpu.dimension_semantics<parallel>], iteration_bounds = array<i64: 1>, scalar_prefetch = 0 : i64, scratch_operands = 0 : i64, tpu.core_type = #tpu.core_type<tc>, window_params = [{pipeline_mode = #tpu.pipeline_mode<synchronous>, transform_indices = @transform_0, window_bounds = array<i64: 1, 1152>}, {transform_indices = @transform_1, window_bounds = array<i64: 1152, 256>}, {transform_indices = @transform_2, window_bounds = array<i64: 1, 256>}, {transform_indices = @transform_3, window_bounds = array<i64: 1, 256>}]} {
    %c0 = arith.constant 0 : index
    %c0_0 = arith.constant 0 : index
    %0 = vector.load %arg1[%c0, %c0_0] : memref<1x1152xf32, #tpu.memory_space<vmem>>, vector<1x1152xf32>
    %1 = arith.truncf %0 : vector<1x1152xf32> to vector<1x1152xbf16>
    %c0_1 = arith.constant 0 : index
    %c0_2 = arith.constant 0 : index
    %2 = vector.load %arg2[%c0_1, %c0_2] : memref<1152x256xbf16, #tpu.memory_space<vmem>>, vector<1152x256xbf16>
    %cst = arith.constant dense<0.000000e+00> : vector<1x256xf32>
    %3 = tpu.matmul %1, %2, %cst {dimension_numbers = #tpu.dot_dimension_numbers<[1], [0], [0], [1], [0, 0, 1, 1], [], []>} : vector<1x1152xbf16>, vector<1152x256xbf16>, vector<1x256xf32> -> vector<1x256xf32>
    %c0_3 = arith.constant 0 : index
    %c0_4 = arith.constant 0 : index
    %4 = vector.load %arg3[%c0_3, %c0_4] : memref<1x256xf32, #tpu.memory_space<vmem>>, vector<1x256xf32>
    %5 = arith.addf %3, %4 : vector<1x256xf32>
    %cst_5 = arith.constant 0.000000e+00 : f32
    %6 = vector.broadcast %cst_5 : f32 to vector<1x256xf32>
    %7 = arith.maximumf %5, %6 : vector<1x256xf32>
    %c0_6 = arith.constant 0 : index
    %c0_7 = arith.constant 0 : index
    %8 = vector.load %arg4[%c0_6, %c0_7] : memref<1x256xf32, #tpu.memory_space<vmem>>, vector<1x256xf32>
    tpu.vector_store %arg4[%c0_6, %c0_7], %7 {strides = array<i32>} : memref<1x256xf32, #tpu.memory_space<vmem>>, vector<1x256xf32>,
    return
  }
  func.func @transform_0(%arg0: i32) -> (i32, i32) {
    %c0_i32 = arith.constant 0 : i32
    %c0_i32_0 = arith.constant 0 : i32
    %c0_i32_1 = arith.constant 0 : i32
    return %c0_i32, %c0_i32_0 : i32, i32
  }
  func.func @transform_1(%arg0: i32) -> (i32, i32) {
    %c0_i32 = arith.constant 0 : i32
    %c0_i32_0 = arith.constant 0 : i32
    return %c0_i32, %arg0 : i32, i32
  }
  func.func @transform_2(%arg0: i32) -> (i32, i32) {
    %c0_i32 = arith.constant 0 : i32
    %c0_i32_0 = arith.constant 0 : i32
    return %c0_i32, %arg0 : i32, i32
  }
  func.func @transform_3(%arg0: i32) -> (i32, i32) {
    %c0_i32 = arith.constant 0 : i32
    %c0_i32_0 = arith.constant 0 : i32
    return %c0_i32, %arg0 : i32, i32
  }
}

</mosaic_0001>

<bundles_post_ra>
// kernel: tpu_custom_call.1
= control target key start
LH: loop header
LB: loop body
LE: loop exit
PB: predicated region body
PF: predicated region fallthrough
CT: control target
= control target key end

     0   :  { %8 = vsyncpa [#allocation3], 0  ;;  %s1726_s0 = inlined_call_operand.hbm [shape: f32[1,1152], index: 0, kind: input, shape index: {}]   ;;  %s1727_s1 = inlined_call_operand.hbm [shape: bf16[1152,256], index: 1, kind: input, shape index: {}]   ;;  %s1728_s2 = inlined_call_operand.vmem [shape: f32[1,256], index: 2, kind: input, shape index: {}]   ;;  %s1729_s3 = inlined_call_operand.hbm [shape: f32[1,256], index: 3, kind: output, shape index: {}]  }
   0x1   :  { %9 = vsyncpa [#allocation6], 0 }
   0x2   :  { %10 = vsyncpa [#allocation4], 0  ;;  %s1656_s12 = smov [#allocation2]   ;;  %s1657_s14 = smov [#allocation5]  }
   0x3   :  { %s17_s13 = sshll.u32 %s1656_s12, 4  ;;  %s26_s15 = sshll.u32 %s1657_s14, 4  ;;  %s18_s13 = int_to_ptr.vmem [resolvable:$true] %s17_s13  ;;  %s27_s15 = int_to_ptr.vmem [resolvable:$true] %s26_s15 }
   0x4   :  { %s1598_s16 = scalar_lea.vmem %s18_s13, 144  ;;  %s1602_s17 = scalar_lea.vmem %s18_s13, 160 }
   0x5   :  { %p1599_p0 = scmp.ne.s32.totalorder %s18_s13, %s1598_s16  ;;  %p1603_p1 = scmp.lt.s32.totalorder %s18_s13, %s18_s13 }
   0x6   :  { %p1604_p2 = scmp.lt.s32.totalorder %s1602_s17, %s1598_s16 }
   0x8   :  { %p1605_p3 = por %p1604_p2, %p1603_p1 }
   0xa   :  { %p1606_p4 = pnand %p1605_p3, %p1599_p0 }
   0xc   :  { %1609 = shalt.err (!%p1606_p4)
}
   0xd   :  { %20 = dma.hbm_to_vmem [thread:$0]  %s1726_s0, 144, %s18_s13, [#allocation3]  }
   0xe   :  { %s1618_s20 = scalar_lea.vmem %s27_s15, 18432  ;;  %p1623_p6 = scmp.lt.s32.totalorder %s27_s15, %s27_s15 }
   0xf   :  { %p1619_p5 = scmp.ne.s32.totalorder %s27_s15, %s1618_s20  ;;  %p1624_p7 = scmp.lt.s32.totalorder %s1618_s20, %s1618_s20 }
  0x11   :  { %p1625_p8 = por %p1624_p7, %p1623_p6 }
  0x13   :  { %p1626_p9 = pnand %p1625_p8, %p1619_p5 }
  0x15   :  { %1629 = shalt.err (!%p1626_p9)
}
  0x16   :  { %s1658_s21 = smov 128   ;;  %s1659_s22 = smov 8  }
  0x17   :  { %32 = dma.hbm_to_vmem [thread:$0]  %s1727_s1, 18432, %s27_s15, [#allocation6], %s1658_s21, %s1658_s21, %s1659_s22  }
  0x18   :  { %1650 = dma.done.wait [#allocation3], 144  }
  0x19   :  { %1651 = vsyncadd [#allocation3], 4294967152 }
  0x1a   :  { %1652 = dma.done.wait [#allocation6], 18432  }
  0x1b   :  { %1653 = vsyncadd [#allocation6], 4294948864  ;;  %v1374_v0 = vld [vmem:[#allocation5 + $0x74] ss:$8 sps:$4 sm:$0xff]   ;;  %v1376_v1 = vld [vmem:[#allocation5 + $0x70] ss:$8 sps:$4 sm:$0xff]   ;;  %v46_v35 = vlaneseq }
  0x1c   :  { %976 = vmatprep.subr.bf16.mxu0 %v1374_v0  ;;  %v1377_v2 = vld [vmem:[#allocation5 + $0x174] ss:$8 sps:$4 sm:$0xff]   ;;  %v1379_v3 = vld [vmem:[#allocation5 + $0x170] ss:$8 sps:$4 sm:$0xff]   ;;  %v1380_v4 = vld [vmem:[#allocation5 + $0x64] ss:$8 sps:$4 sm:$0xff]  }
  0x1d   :  { %977 = vmatpush1.bf16.msra.mxu0 %v1376_v1  ;;  %v1382_v5 = vld [vmem:[#allocation5 + $0x60] ss:$8 sps:$4 sm:$0xff]   ;;  %1017 = vmatprep.subr.bf16.mxu1 %v1377_v2  ;;  %v1383_v6 = vld [vmem:[#allocation5 + $0x164] ss:$8 sps:$4 sm:$0xff]   ;;  %v1386_v8 = vld [vmem:[#allocation5 + $0x54] ss:$8 sps:$4 sm:$0xff]  }
  0x1e   :  { %1018 = vmatpush1.bf16.msra.mxu1 %v1379_v3  ;;  %978 = vmatprep.subr.bf16.mxu0 %v1380_v4  ;;  %v1385_v7 = vld [vmem:[#allocation5 + $0x160] ss:$8 sps:$4 sm:$0xff]   ;;  %v1388_v9 = vld [vmem:[#allocation5 + $0x50] ss:$8 sps:$4 sm:$0xff]   ;;  %v1389_v10 = vld [vmem:[#allocation5 + $0x154] ss:$8 sps:$4 sm:$0xff]  }
  0x1f   :  { %1019 = vmatprep.subr.bf16.mxu1 %v1383_v6  ;;  %v1392_v11 = vld [vmem:[#allocation5 + $0x44] ss:$8 sps:$4 sm:$0xff]   ;;  %v1391_v12 = vld [vmem:[#allocation5 + $0x150] ss:$8 sps:$4 sm:$0xff]   ;;  %v1394_v14 = vld [vmem:[#allocation5 + $0x40] ss:$8 sps:$4 sm:$0xff]  }
  0x20   :  { %v1395_v13 = vld [vmem:[#allocation5 + $0x144] ss:$8 sps:$4 sm:$0xff]   ;;  %v1398_v15 = vld [vmem:[#allocation5 + $0x34] ss:$8 sps:$4 sm:$0xff]   ;;  %v1397_v16 = vld [vmem:[#allocation5 + $0x140] ss:$8 sps:$4 sm:$0xff]  }
  0x21   :  { %979 = vmatpush1.bf16.msra.mxu0 %v1382_v5  ;;  %v1401_v17 = vld [vmem:[#allocation5 + $0x134] ss:$8 sps:$4 sm:$0xff]   ;;  %v1400_v18 = vld [vmem:[#allocation5 + $0x30] ss:$8 sps:$4 sm:$0xff]   ;;  %v1404_v19 = vld [vmem:[#allocation5 + $0x24] ss:$8 sps:$4 sm:$0xff]  }
  0x22   :  { %980 = vmatprep.subr.bf16.mxu0 %v1386_v8  ;;  %1020 = vmatpush1.bf16.msra.mxu1 %v1385_v7  ;;  %v1403_v20 = vld [vmem:[#allocation5 + $0x130] ss:$8 sps:$4 sm:$0xff]   ;;  %v1407_v21 = vld [vmem:[#allocation5 + $0x124] ss:$8 sps:$4 sm:$0xff]   ;;  %v1406_v22 = vld [vmem:[#allocation5 + $0x20] ss:$8 sps:$4 sm:$0xff]  }
  0x23   :  { %1021 = vmatprep.subr.bf16.mxu1 %v1389_v10  ;;  %v1410_v23 = vld [vmem:[#allocation5 + $0x14] ss:$8 sps:$4 sm:$0xff]   ;;  %v1409_v24 = vld [vmem:[#allocation5 + $0x120] ss:$8 sps:$4 sm:$0xff]   ;;  %v1412_v26 = vld [vmem:[#allocation5 + $0x10] ss:$8 sps:$4 sm:$0xff]  }
  0x24   :  { %v1413_v25 = vld [vmem:[#allocation5 + $0x114] ss:$8 sps:$4 sm:$0xff]   ;;  %v1416_v27 = vld [vmem:[#allocation5 + $0x4] ss:$8 sps:$4 sm:$0xff]   ;;  %v1415_v28 = vld [vmem:[#allocation5 + $0x110] ss:$8 sps:$4 sm:$0xff]  }
  0x25   :  { %981 = vmatpush1.bf16.msra.mxu0 %v1388_v9  ;;  %v1419_v29 = vld [vmem:[#allocation5 + $0x104] ss:$8 sps:$4 sm:$0xff]   ;;  %v1418_v30 = vld [vmem:[#allocation5] ss:$8 sps:$4 sm:$0xff]   ;;  %v1422_v31 = vld [vmem:[#allocation5 + $0xf4] ss:$8 sps:$4 sm:$0xff]  }
  0x26   :  { %982 = vmatprep.subr.bf16.mxu0 %v1392_v11  ;;  %1022 = vmatpush1.bf16.msra.mxu1 %v1391_v12  ;;  %v1421_v32 = vld [vmem:[#allocation5 + $0x100] ss:$8 sps:$4 sm:$0xff]   ;;  %v1425_v33 = vld [vmem:[#allocation5 + $0x1f4] ss:$8 sps:$4 sm:$0xff]   ;;  %v1424_v34 = vld [vmem:[#allocation5 + $0xf0] ss:$8 sps:$4 sm:$0xff]  }
  0x27   :  { %1023 = vmatprep.subr.bf16.mxu1 %v1395_v13  ;;  %v1428_v36 = vld [vmem:[#allocation5 + $0xe4] ss:$8 sps:$4 sm:$0xff]   ;;  %v1427_v37 = vld [vmem:[#allocation5 + $0x1f0] ss:$8 sps:$4 sm:$0xff]   ;;  %v1430_v39 = vld [vmem:[#allocation5 + $0xe0] ss:$8 sps:$4 sm:$0xff]  }
  0x28   :  { %v1431_v38 = vld [vmem:[#allocation5 + $0x1e4] ss:$8 sps:$4 sm:$0xff]   ;;  %v1690_v40 = vshrl.u32 %v46_v35, 7  ;;  %v1434_v41 = vld [vmem:[#allocation5 + $0xd4] ss:$8 sps:$4 sm:$0xff]   ;;  %vm1203_vm0 = vcmp.lt.s32.totalorder %v46_v35, 256 }
  0x29   :  { %983 = vmatpush1.bf16.msra.mxu0 %v1394_v14  ;;  %v1433_v42 = vld [vmem:[#allocation5 + $0x1e0] ss:$8 sps:$4 sm:$0xff]   ;;  %v1437_v43 = vld [vmem:[#allocation5 + $0x1d4] ss:$8 sps:$4 sm:$0xff]   ;;  %v1436_v44 = vld [vmem:[#allocation5 + $0xd0] ss:$8 sps:$4 sm:$0xff]  }
  0x2a   :  { %984 = vmatprep.subr.bf16.mxu0 %v1398_v15  ;;  %1024 = vmatpush1.bf16.msra.mxu1 %v1397_v16  ;;  %v52_v45 = vsub.s32 1, %v1690_v40  ;;  %v60_v46 = vsub.s32 3, %v1690_v40  ;;  %v1440_v47 = vld [vmem:[#allocation5 + $0xc4] ss:$8 sps:$4 sm:$0xff]   ;;  %v1439_v48 = vld [vmem:[#allocation5 + $0x1d0] ss:$8 sps:$4 sm:$0xff]  }
  0x2b   :  { %1025 = vmatprep.subr.bf16.mxu1 %v1401_v17  ;;  %v1443_v49 = vld [vmem:[#allocation5 + $0x1c4] ss:$8 sps:$4 sm:$0xff]   ;;  %v1694_v50 = vld [vmem:[#allocation2] sm:$0xff]  ;;  %v1442_v51 = vld [vmem:[#allocation5 + $0xc0] ss:$8 sps:$4 sm:$0xff]   ;;  %v48_v3 = vsub.s32 0, %v1690_v40 }
  0x2c   :  { %v53_v52 = vrot.slane %v1694_v50, %v52_v45  ;;  %v61_v53 = vrot.slane %v1694_v50, %v60_v46  ;;  %v1446_v54 = vld [vmem:[#allocation5 + $0xb4] ss:$8 sps:$4 sm:$0xff]   ;;  %v1445_v55 = vld [vmem:[#allocation5 + $0x1c0] ss:$8 sps:$4 sm:$0xff]   ;;  %v1448_v59 = vld [vmem:[#allocation5 + $0xb0] ss:$8 sps:$4 sm:$0xff]  }
  0x2d   :  { %985 = vmatpush1.bf16.msra.mxu0 %v1400_v18  ;;  %v1449_v58 = vld [vmem:[#allocation5 + $0x1b4] ss:$8 sps:$4 sm:$0xff]   ;;  %v1452_v60 = vld [vmem:[#allocation5 + $0xa4] ss:$8 sps:$4 sm:$0xff]   ;;  %v1451_v61 = vld [vmem:[#allocation5 + $0x1b0] ss:$8 sps:$4 sm:$0xff]   ;;  %v49_v11 = vrot.slane %v1694_v50, %v48_v3 }
  0x2e   :  { %986 = vmatprep.subr.bf16.mxu0 %v1404_v19  ;;  %1026 = vmatpush1.bf16.msra.mxu1 %v1403_v20  ;;  %v92_v56 = vpack.c.bf16 %v53_v52, %v53_v52  ;;  %v94_v57 = vpack.c.bf16 %v61_v53, %v61_v53  ;;  %v1455_v62 = vld [vmem:[#allocation5 + $0x1a4] ss:$8 sps:$4 sm:$0xff]   ;;  %v1454_v63 = vld [vmem:[#allocation5 + $0xa0] ss:$8 sps:$4 sm:$0xff]   ;;  %v1458_v0 = vld [vmem:[#allocation5 + $0x94] ss:$8 sps:$4 sm:$0xff]  }
  0x2f   :  { %1027 = vmatprep.subr.bf16.mxu1 %v1407_v21  ;;  %v1457_v1 = vld [vmem:[#allocation5 + $0x1a0] ss:$8 sps:$4 sm:$0xff]   ;;  %v1461_v2 = vld [vmem:[#allocation5 + $0x194] ss:$8 sps:$4 sm:$0xff]   ;;  %v1460_v4 = vld [vmem:[#allocation5 + $0x90] ss:$8 sps:$4 sm:$0xff]   ;;  %v91_v18 = vpack.c.bf16 %v49_v11, %v49_v11 }
  0x30   :  { %1008 = vmatprep.mubr.bf16.mxu0 %v92_v56  ;;  %1049 = vmatprep.mubr.bf16.mxu1 %v94_v57  ;;  %v68_v5 = vsub.s32 5, %v1690_v40  ;;  %v1464_v6 = vld [vmem:[#allocation5 + $0x84] ss:$8 sps:$4 sm:$0xff]   ;;  %v56_v7 = vsub.s32 2, %v1690_v40  ;;  %v1463_v8 = vld [vmem:[#allocation5 + $0x190] ss:$8 sps:$4 sm:$0xff]  }
  0x31   :  { %987 = vmatpush1.bf16.msra.mxu0 %v1406_v22  ;;  %v76_v9 = vsub.s32 7, %v1690_v40  ;;  %v1467_v10 = vld [vmem:[#allocation5 + $0x184] ss:$8 sps:$4 sm:$0xff]   ;;  %v1466_v12 = vld [vmem:[#allocation5 + $0x80] ss:$8 sps:$4 sm:$0xff]  }
  0x32   :  { %988 = vmatprep.subr.bf16.mxu0 %v1410_v23  ;;  %1028 = vmatpush1.bf16.msra.mxu1 %v1409_v24  ;;  %v69_v13 = vrot.slane %v1694_v50, %v68_v5  ;;  %v1472_v14 = vld [vmem:[#allocation5 + $0x274] ss:$8 sps:$4 sm:$0xff]   ;;  %v57_v15 = vrot.slane %v1694_v50, %v56_v7  ;;  %v1469_v16 = vld [vmem:[#allocation5 + $0x180] ss:$8 sps:$4 sm:$0xff]   ;;  %v1470_v20 = vld [vmem:[#allocation5 + $0x270] ss:$8 sps:$4 sm:$0xff]  }
  0x33   :  { %1029 = vmatprep.subr.bf16.mxu1 %v1413_v25  ;;  %v77_v17 = vrot.slane %v1694_v50, %v76_v9  ;;  %v1475_v19 = vld [vmem:[#allocation5 + $0x374] ss:$8 sps:$4 sm:$0xff]   ;;  %v1478_v23 = vld [vmem:[#allocation5 + $0x264] ss:$8 sps:$4 sm:$0xff]   ;;  %v1473_v24 = vld [vmem:[#allocation5 + $0x370] ss:$8 sps:$4 sm:$0xff]  }
  0x34   :  { %v96_v21 = vpack.c.bf16 %v69_v13, %v69_v13  ;;  %v93_v22 = vpack.c.bf16 %v57_v15, %v57_v15  ;;  %v1500_v46 = vld [vmem:[#allocation5 + $0x220] ss:$8 sps:$4 sm:$0xff]   ;;  %v1514_v52 = vld [vmem:[#allocation5 + $0x204] ss:$8 sps:$4 sm:$0xff]   ;;  %v1509_v53 = vld [vmem:[#allocation5 + $0x310] ss:$8 sps:$4 sm:$0xff]  }
  0x35   :  { %989 = vmatpush1.bf16.msra.mxu0 %v1412_v26  ;;  %v98_v25 = vpack.c.bf16 %v77_v17, %v77_v17  ;;  %v1481_v26 = vld [vmem:[#allocation5 + $0x364] ss:$8 sps:$4 sm:$0xff]   ;;  %v1520_v56 = vld [vmem:[#allocation5 + $0x2f4] ss:$8 sps:$4 sm:$0xff]   ;;  %v1515_v57 = vld [vmem:[#allocation5 + $0x300] ss:$8 sps:$4 sm:$0xff]  }
  0x36   :  { %990 = vmatprep.subr.bf16.mxu0 %v1416_v27  ;;  %1030 = vmatpush1.bf16.msra.mxu1 %v1415_v28  ;;  %v1476_v27 = vld [vmem:[#allocation5 + $0x260] ss:$8 sps:$4 sm:$0xff]   ;;  %v1484_v28 = vld [vmem:[#allocation5 + $0x254] ss:$8 sps:$4 sm:$0xff]   ;;  %v1538_v5 = vld [vmem:[#allocation5 + $0x2c4] ss:$8 sps:$4 sm:$0xff]  }
  0x37   :  { %1031 = vmatprep.subr.bf16.mxu1 %v1419_v29  ;;  %v1479_v29 = vld [vmem:[#allocation5 + $0x360] ss:$8 sps:$4 sm:$0xff]   ;;  %v1541_v7 = vld [vmem:[#allocation5 + $0x3c4] ss:$8 sps:$4 sm:$0xff]   ;;  %v1544_v9 = vld [vmem:[#allocation5 + $0x2b4] ss:$8 sps:$4 sm:$0xff]  }
  0x38   :  { %v1547_v11 = vld [vmem:[#allocation5 + $0x3b4] ss:$8 sps:$4 sm:$0xff]   ;;  %v1550_v13 = vld [vmem:[#allocation5 + $0x2a4] ss:$8 sps:$4 sm:$0xff]  }
  0x39   :  { %991 = vmatpush1.bf16.msra.mxu0 %v1418_v30  ;;  %v1487_v30 = vld [vmem:[#allocation5 + $0x354] ss:$8 sps:$4 sm:$0xff]   ;;  %v1553_v15 = vld [vmem:[#allocation5 + $0x3a4] ss:$8 sps:$4 sm:$0xff]  }
  0x3a   :  { %992 = vmatprep.subr.bf16.mxu0 %v1422_v31  ;;  %1032 = vmatpush1.bf16.msra.mxu1 %v1421_v32  ;;  %v1482_v31 = vld [vmem:[#allocation5 + $0x250] ss:$8 sps:$4 sm:$0xff]   ;;  %v1490_v32 = vld [vmem:[#allocation5 + $0x244] ss:$8 sps:$4 sm:$0xff]   ;;  %v1556_v17 = vld [vmem:[#allocation5 + $0x294] ss:$8 sps:$4 sm:$0xff]  }
  0x3b   :  { %1033 = vmatprep.subr.bf16.mxu1 %v1425_v33  ;;  %v1485_v33 = vld [vmem:[#allocation5 + $0x350] ss:$8 sps:$4 sm:$0xff]  }
  0x3d   :  { %993 = vmatpush2.bf16.msra.mxu0 %v1424_v34  ;;  %v1493_v34 = vld [vmem:[#allocation5 + $0x344] ss:$8 sps:$4 sm:$0xff]  }
  0x3e   :  { %994 = vmatprep.subr.bf16.mxu0 %v1428_v36  ;;  %1034 = vmatpush2.bf16.msra.mxu1 %v1427_v37  ;;  %v1488_v36 = vld [vmem:[#allocation5 + $0x240] ss:$8 sps:$4 sm:$0xff]   ;;  %v1496_v37 = vld [vmem:[#allocation5 + $0x234] ss:$8 sps:$4 sm:$0xff]  }
  0x3f   :  { %1035 = vmatprep.subr.bf16.mxu1 %v1431_v38  ;;  %v1491_v38 = vld [vmem:[#allocation5 + $0x340] ss:$8 sps:$4 sm:$0xff]  }
  0x41   :  { %995 = vmatpush2.bf16.msra.mxu0 %v1430_v39  ;;  %v1499_v39 = vld [vmem:[#allocation5 + $0x334] ss:$8 sps:$4 sm:$0xff]  }
  0x42   :  { %996 = vmatprep.subr.bf16.mxu0 %v1434_v41  ;;  %1036 = vmatpush2.bf16.msra.mxu1 %v1433_v42  ;;  %v1494_v41 = vld [vmem:[#allocation5 + $0x230] ss:$8 sps:$4 sm:$0xff]   ;;  %v1502_v42 = vld [vmem:[#allocation5 + $0x224] ss:$8 sps:$4 sm:$0xff]  }
  0x43   :  { %1037 = vmatprep.subr.bf16.mxu1 %v1437_v43  ;;  %v1497_v43 = vld [vmem:[#allocation5 + $0x330] ss:$8 sps:$4 sm:$0xff]  }
  0x45   :  { %997 = vmatpush2.bf16.msra.mxu0 %v1436_v44  ;;  %v1505_v44 = vld [vmem:[#allocation5 + $0x324] ss:$8 sps:$4 sm:$0xff]  }
  0x46   :  { %998 = vmatprep.subr.bf16.mxu0 %v1440_v47  ;;  %1038 = vmatpush2.bf16.msra.mxu1 %v1439_v48  ;;  %v1508_v47 = vld [vmem:[#allocation5 + $0x214] ss:$8 sps:$4 sm:$0xff]   ;;  %v1503_v48 = vld [vmem:[#allocation5 + $0x320] ss:$8 sps:$4 sm:$0xff]  }
  0x47   :  { %1039 = vmatprep.subr.bf16.mxu1 %v1443_v49  ;;  %v1511_v49 = vld [vmem:[#allocation5 + $0x314] ss:$8 sps:$4 sm:$0xff]  }
  0x49   :  { %999 = vmatpush2.bf16.msra.mxu0 %v1442_v51  ;;  %v1506_v51 = vld [vmem:[#allocation5 + $0x210] ss:$8 sps:$4 sm:$0xff]  }
  0x4a   :  { %1000 = vmatprep.subr.bf16.mxu0 %v1446_v54  ;;  %1040 = vmatpush2.bf16.msra.mxu1 %v1445_v55  ;;  %v1517_v54 = vld [vmem:[#allocation5 + $0x304] ss:$8 sps:$4 sm:$0xff]   ;;  %v1512_v55 = vld [vmem:[#allocation5 + $0x200] ss:$8 sps:$4 sm:$0xff]  }
  0x4b   :  { %1041 = vmatprep.subr.bf16.mxu1 %v1449_v58  ;;  %v1523_v58 = vld [vmem:[#allocation5 + $0x3f4] ss:$8 sps:$4 sm:$0xff]  }
  0x4d   :  { %1001 = vmatpush2.bf16.msra.mxu0 %v1448_v59  ;;  %v1518_v59 = vld [vmem:[#allocation5 + $0x2f0] ss:$8 sps:$4 sm:$0xff]  }
  0x4e   :  { %1002 = vmatprep.subr.bf16.mxu0 %v1452_v60  ;;  %1042 = vmatpush2.bf16.msra.mxu1 %v1451_v61  ;;  %v1526_v60 = vld [vmem:[#allocation5 + $0x2e4] ss:$8 sps:$4 sm:$0xff]   ;;  %v1521_v61 = vld [vmem:[#allocation5 + $0x3f0] ss:$8 sps:$4 sm:$0xff]  }
  0x4f   :  { %1043 = vmatprep.subr.bf16.mxu1 %v1455_v62  ;;  %v1529_v62 = vld [vmem:[#allocation5 + $0x3e4] ss:$8 sps:$4 sm:$0xff]  }
  0x51   :  { %1003 = vmatpush2.bf16.msra.mxu0 %v1454_v63  ;;  %v1524_v63 = vld [vmem:[#allocation5 + $0x2e0] ss:$8 sps:$4 sm:$0xff]  }
  0x52   :  { %1004 = vmatprep.subr.bf16.mxu0 %v1458_v0  ;;  %1044 = vmatpush2.bf16.msra.mxu1 %v1457_v1  ;;  %v1532_v0 = vld [vmem:[#allocation5 + $0x2d4] ss:$8 sps:$4 sm:$0xff]   ;;  %v1527_v1 = vld [vmem:[#allocation5 + $0x3e0] ss:$8 sps:$4 sm:$0xff]  }
  0x53   :  { %1045 = vmatprep.subr.bf16.mxu1 %v1461_v2  ;;  %v1535_v2 = vld [vmem:[#allocation5 + $0x3d4] ss:$8 sps:$4 sm:$0xff]  }
  0x55   :  { %1005 = vmatpush2.bf16.msra.mxu0 %v1460_v4  ;;  %v1530_v4 = vld [vmem:[#allocation5 + $0x2d0] ss:$8 sps:$4 sm:$0xff]  }
  0x56   :  { %1006 = vmatprep.subr.bf16.mxu0 %v1464_v6  ;;  %1046 = vmatpush2.bf16.msra.mxu1 %v1463_v8  ;;  %v1533_v6 = vld [vmem:[#allocation5 + $0x3d0] ss:$8 sps:$4 sm:$0xff]   ;;  %v1536_v8 = vld [vmem:[#allocation5 + $0x2c0] ss:$8 sps:$4 sm:$0xff]  }
  0x57   :  { %1047 = vmatprep.subr.bf16.mxu1 %v1467_v10  ;;  %v1539_v10 = vld [vmem:[#allocation5 + $0x3c0] ss:$8 sps:$4 sm:$0xff]  }
  0x59   :  { %1007 = vmatpush2.bf16.msra.mxu0 %v1466_v12  ;;  %v1542_v12 = vld [vmem:[#allocation5 + $0x2b0] ss:$8 sps:$4 sm:$0xff]  }
  0x5a   :  { %1058 = vmatprep.subr.bf16.mxu0 %v1472_v14  ;;  %1048 = vmatpush2.bf16.msra.mxu1 %v1469_v16  ;;  %v1545_v14 = vld [vmem:[#allocation5 + $0x3b0] ss:$8 sps:$4 sm:$0xff]   ;;  %v1548_v16 = vld [vmem:[#allocation5 + $0x2a0] ss:$8 sps:$4 sm:$0xff]  }
  0x5b   :  { %1099 = vmatprep.subr.bf16.mxu1 %v1475_v19  ;;  %v1559_v19 = vld [vmem:[#allocation5 + $0x394] ss:$8 sps:$4 sm:$0xff]  }
  0x5c   :  { %1009 = vmatmul.mubr.bf16.vlgmr.msra.gmra.mxu0 %v91_v18  ;;  %v1551_v18 = vld [vmem:[#allocation5 + $0x3a0] ss:$8 sps:$4 sm:$0xff]  }
  0x5d   :  { %1059 = vmatpush1.bf16.msra.mxu0 %v1470_v20  ;;  %1090 = vmatprep.mubr.bf16.mxu0 %v96_v21  ;;  %v64_v20 = vsub.s32 4, %v1690_v40  ;;  %v1554_v21 = vld [vmem:[#allocation5 + $0x290] ss:$8 sps:$4 sm:$0xff]  }
  0x5e   :  { %1050 = vmatmul.mubr.bf16.vlgmr.msra.gmra.mxu1 %v93_v22  ;;  %1060 = vmatprep.subr.bf16.mxu0 %v1478_v23  ;;  %v1562_v22 = vld [vmem:[#allocation5 + $0x284] ss:$8 sps:$4 sm:$0xff]   ;;  %v72_v23 = vsub.s32 6, %v1690_v40 }
  0x5f   :  { %1100 = vmatpush1.bf16.msra.mxu1 %v1473_v24  ;;  %1131 = vmatprep.mubr.bf16.mxu1 %v98_v25  ;;  %v1557_v24 = vld [vmem:[#allocation5 + $0x390] ss:$8 sps:$4 sm:$0xff]   ;;  %v1565_v25 = vld [vmem:[#allocation5 + $0x384] ss:$8 sps:$4 sm:$0xff]  }
  0x60   :  { %1101 = vmatprep.subr.bf16.mxu1 %v1481_v26  ;;  %v65_v26 = vrot.slane %v1694_v50, %v64_v20 }
  0x61   :  { %1061 = vmatpush1.bf16.msra.mxu0 %v1476_v27  ;;  %v1560_v27 = vld [vmem:[#allocation5 + $0x280] ss:$8 sps:$4 sm:$0xff]  }
  0x62   :  { %1062 = vmatprep.subr.bf16.mxu0 %v1484_v28  ;;  %v1568_v28 = vld [vmem:[#allocation5 + $0x474] ss:$8 sps:$4 sm:$0xff]  }
  0x63   :  { %1102 = vmatpush1.bf16.msra.mxu1 %v1479_v29  ;;  %v73_v29 = vrot.slane %v1694_v50, %v72_v23  ;;  %v1572_v50 = vld [vmem:[#allocation5 + $0x450] ss:$8 sps:$4 sm:$0xff]  }
  0x64   :  { %1103 = vmatprep.subr.bf16.mxu1 %v1487_v30  ;;  %v1563_v30 = vld [vmem:[#allocation5 + $0x380] ss:$8 sps:$4 sm:$0xff]  }
  0x65   :  { %1063 = vmatpush1.bf16.msra.mxu0 %v1482_v31  ;;  %v95_v31 = vpack.c.bf16 %v65_v26, %v65_v26 }
  0x66   :  { %1064 = vmatprep.subr.bf16.mxu0 %v1490_v32  ;;  %v1566_v32 = vld [vmem:[#allocation5 + $0x470] ss:$8 sps:$4 sm:$0xff]  }
  0x67   :  { %1104 = vmatpush1.bf16.msra.mxu1 %v1485_v33  ;;  %v97_v33 = vpack.c.bf16 %v73_v29, %v73_v29 }
  0x68   :  { %1105 = vmatprep.subr.bf16.mxu1 %v1493_v34  ;;  %v1571_v34 = vld [vmem:[#allocation5 + $0x464] ss:$8 sps:$4 sm:$0xff]  }
  0x69   :  { %1065 = vmatpush1.bf16.msra.mxu0 %v1488_v36  ;;  %v1569_v36 = vld [vmem:[#allocation5 + $0x460] ss:$8 sps:$4 sm:$0xff]  }
  0x6a   :  { %1066 = vmatprep.subr.bf16.mxu0 %v1496_v37  ;;  %v1660_v37 = vmov 0  }
  0x6b   :  { %1106 = vmatpush1.bf16.msra.mxu1 %v1491_v38  ;;  %v1574_v38 = vld [vmem:[#allocation5 + $0x454] ss:$8 sps:$4 sm:$0xff]  }
  0x6c   :  { %1107 = vmatprep.subr.bf16.mxu1 %v1499_v39  ;;  %v1577_v39 = vld [vmem:[#allocation5 + $0x444] ss:$8 sps:$4 sm:$0xff]  }
  0x6d   :  { %1067 = vmatpush1.bf16.msra.mxu0 %v1494_v41  ;;  %v1575_v41 = vld [vmem:[#allocation5 + $0x440] ss:$8 sps:$4 sm:$0xff]  }
  0x6e   :  { %1068 = vmatprep.subr.bf16.mxu0 %v1502_v42  ;;  %v1580_v42 = vld [vmem:[#allocation5 + $0x434] ss:$8 sps:$4 sm:$0xff]  }
  0x6f   :  { %1108 = vmatpush1.bf16.msra.mxu1 %v1497_v43  ;;  %v1578_v43 = vld [vmem:[#allocation5 + $0x430] ss:$8 sps:$4 sm:$0xff]  }
  0x70   :  { %1109 = vmatprep.subr.bf16.mxu1 %v1505_v44  ;;  %v1583_v44 = vld [vmem:[#allocation5 + $0x424] ss:$8 sps:$4 sm:$0xff]  }
  0x71   :  { %1069 = vmatpush1.bf16.msra.mxu0 %v1500_v46  ;;  %v1581_v46 = vld [vmem:[#allocation5 + $0x420] ss:$8 sps:$4 sm:$0xff]  }
  0x72   :  { %1070 = vmatprep.subr.bf16.mxu0 %v1508_v47  ;;  %v1586_v47 = vld [vmem:[#allocation5 + $0x414] ss:$8 sps:$4 sm:$0xff]  }
  0x73   :  { %1110 = vmatpush1.bf16.msra.mxu1 %v1503_v48  ;;  %v1584_v48 = vld [vmem:[#allocation5 + $0x410] ss:$8 sps:$4 sm:$0xff]  }
  0x74   :  { %1111 = vmatprep.subr.bf16.mxu1 %v1511_v49  ;;  %v1589_v49 = vld [vmem:[#allocation5 + $0x404] ss:$8 sps:$4 sm:$0xff]  }
  0x75   :  { %1071 = vmatpush1.bf16.msra.mxu0 %v1506_v51  ;;  %v1587_v51 = vld [vmem:[#allocation5 + $0x400] ss:$8 sps:$4 sm:$0xff]  }
  0x76   :  { %1072 = vmatprep.subr.bf16.mxu0 %v1514_v52  ;;  %v1222_v52 = vld [vmem:[#allocation2 + $0x8] ss:$0 sm:$0xff] }
  0x77   :  { %1112 = vmatpush1.bf16.msra.mxu1 %v1509_v53  ;;  %v99_v53 = vpack.c.bf16 %v1222_v52, %v1222_v52 }
  0x78   :  { %1113 = vmatprep.subr.bf16.mxu1 %v1517_v54  ;;  %v244_v54 = vld [vmem:[%s1728_s2] sm:$0x3]  ;;  %s1662_s2 = smov [#allocation7]  }
  0x79   :  { %1073 = vmatpush1.bf16.msra.mxu0 %v1512_v55  ;;  %v969_v55 = vrot.slane %v244_v54, %v48_v3  ;;  %s1212_s25 = sshll.u32 %s1662_s2, 4  ;;  %s1213_s25 = int_to_ptr.vmem [resolvable:$true] %s1212_s25 }
  0x7a   :  { %1074 = vmatprep.subr.bf16.mxu0 %v1520_v56  ;;  %v973_v56 = vrot.slane %v244_v54, %v52_v45  ;;  %s1630_s26 = scalar_lea.vmem %s1213_s25, 32  ;;  %p1635_p11 = scmp.lt.s32.totalorder %s1213_s25, %s1213_s25 }
  0x7b   :  { %1114 = vmatpush1.bf16.msra.mxu1 %v1515_v57  ;;  %p1631_p10 = scmp.ne.s32.totalorder %s1213_s25, %s1630_s26  ;;  %p1636_p12 = scmp.lt.s32.totalorder %s1630_s26, %s1630_s26 }
  0x7c   :  { %1115 = vmatprep.subr.bf16.mxu1 %v1523_v58 }
  0x7d   :  { %1075 = vmatpush2.bf16.msra.mxu0 %v1518_v59  ;;  %p1637_p13 = por %p1636_p12, %p1635_p11 }
  0x7e   :  { %1076 = vmatprep.subr.bf16.mxu0 %v1526_v60 }
  0x7f   :  { %1116 = vmatpush2.bf16.msra.mxu1 %v1521_v61  ;;  %p1638_p0 = pnand %p1637_p13, %p1631_p10 }
  0x80   :  { %1117 = vmatprep.subr.bf16.mxu1 %v1529_v62 }
  0x81   :  { %1077 = vmatpush2.bf16.msra.mxu0 %v1524_v63 }
  0x82   :  { %1078 = vmatprep.subr.bf16.mxu0 %v1532_v0 }
  0x83   :  { %1118 = vmatpush2.bf16.msra.mxu1 %v1527_v1 }
  0x84   :  { %1119 = vmatprep.subr.bf16.mxu1 %v1535_v2 }
  0x85   :  { %1079 = vmatpush2.bf16.msra.mxu0 %v1530_v4 }
  0x86   :  { %1080 = vmatprep.subr.bf16.mxu0 %v1538_v5 }
  0x87   :  { %1120 = vmatpush2.bf16.msra.mxu1 %v1533_v6 }
  0x88   :  { %1121 = vmatprep.subr.bf16.mxu1 %v1541_v7 }
  0x89   :  { %1081 = vmatpush2.bf16.msra.mxu0 %v1536_v8 }
  0x8a   :  { %1082 = vmatprep.subr.bf16.mxu0 %v1544_v9 }
  0x8b   :  { %1122 = vmatpush2.bf16.msra.mxu1 %v1539_v10 }
  0x8c   :  { %1123 = vmatprep.subr.bf16.mxu1 %v1547_v11 }
  0x8d   :  { %1083 = vmatpush2.bf16.msra.mxu0 %v1542_v12 }
  0x8e   :  { %1084 = vmatprep.subr.bf16.mxu0 %v1550_v13 }
  0x8f   :  { %1124 = vmatpush2.bf16.msra.mxu1 %v1545_v14  ;;  %v1661_v14 = vmov 1966171168  }
  0x90   :  { %1125 = vmatprep.subr.bf16.mxu1 %v1553_v15  ;;  %v1187_v15 = vunpack.c.l.s4 %v1661_v14 }
  0x91   :  { %1085 = vmatpush2.bf16.msra.mxu0 %v1548_v16 }
  0x92   :  { %1086 = vmatprep.subr.bf16.mxu0 %v1556_v17  ;;  %v1188_v20 = vunpack.c.0.s8 %v1187_v15 }
  0x93   :  { %1126 = vmatpush2.bf16.msra.mxu1 %v1551_v18 }
  0x94   :  { %1127 = vmatprep.subr.bf16.mxu1 %v1559_v19  ;;  %v1191_v26 = vsub.s32 %v1188_v20, %v1690_v40 }
  0x95   :  { %1087 = vmatpush2.bf16.msra.mxu0 %v1554_v21 }
  0x96   :  { %1088 = vmatprep.subr.bf16.mxu0 %v1562_v22 }
  0x97   :  { %1128 = vmatpush2.bf16.msra.mxu1 %v1557_v24 }
  0x98   :  { %1129 = vmatprep.subr.bf16.mxu1 %v1565_v25 }
  0x99   :  { %1089 = vmatpush2.bf16.msra.mxu0 %v1560_v27 }
  0x9a   :  { %1140 = vmatprep.subr.bf16.mxu0 %v1568_v28 }
  0x9b   :  { %1130 = vmatpush2.bf16.msra.mxu1 %v1563_v30 }
  0x9c   :  { %1091 = vmatmul.mubr.bf16.vlgmr.msra.gmra.mxu0 %v95_v31 }
  0x9d   :  { %1141 = vmatpush1.bf16.msra.mxu0 %v1566_v32  ;;  %1172 = vmatprep.mubr.bf16.mxu0 %v1660_v37 }
  0x9e   :  { %1132 = vmatmul.mubr.bf16.vlgmr.msra.gmra.mxu1 %v97_v33  ;;  %1142 = vmatprep.subr.bf16.mxu0 %v1571_v34 }
  0xa1   :  { %1143 = vmatpush1.bf16.msra.mxu0 %v1569_v36 }
  0xa2   :  { %1144 = vmatprep.subr.bf16.mxu0 %v1574_v38 }
  0xa5   :  { %1145 = vmatpush1.bf16.msra.mxu0 %v1572_v50 }
  0xa6   :  { %1146 = vmatprep.subr.bf16.mxu0 %v1577_v39 }
  0xa9   :  { %1147 = vmatpush1.bf16.msra.mxu0 %v1575_v41 }
  0xaa   :  { %1148 = vmatprep.subr.bf16.mxu0 %v1580_v42 }
  0xad   :  { %1149 = vmatpush1.bf16.msra.mxu0 %v1578_v43 }
  0xae   :  { %1150 = vmatprep.subr.bf16.mxu0 %v1583_v44 }
  0xb1   :  { %1151 = vmatpush1.bf16.msra.mxu0 %v1581_v46 }
  0xb2   :  { %1152 = vmatprep.subr.bf16.mxu0 %v1586_v47 }
  0xb5   :  { %1153 = vmatpush1.bf16.msra.mxu0 %v1584_v48 }
  0xb6   :  { %1154 = vmatprep.subr.bf16.mxu0 %v1589_v49 }
  0xb9   :  { %1155 = vmatpush1.bf16.msra.mxu0 %v1587_v51 }
  0xbc   :  { %1173 = vmatmul.mubr.bf16.vlgmr.msra.gmra.mxu0 %v99_v53 }
 0x11c   :  { %v1010_v57 = vpop.f32.mrf.mxu0 }
 0x11d   :  { %v1011_v58 = vadd.f32 %v1010_v57, %v969_v55 }
 0x11e   :  { %v1012_v59 = vpop.f32.mrf.mxu0  ;;  %v1051_v60 = vpop.f32.mrf.mxu1 }
 0x11f   :  { %v1013_v61 = vadd.f32 %v1012_v59, %v973_v56  ;;  %v1052_v62 = vadd.f32 %v1051_v60, %v1011_v58 }
 0x120   :  { %v1014_v63 = vpop.f32.mrf.mxu0  ;;  %v1053_v0 = vpop.f32.mrf.mxu1 }
 0x121   :  { %v1054_v1 = vadd.f32 %v1053_v0, %v1013_v61 }
 0x122   :  { %v1015_v2 = vpop.f32.mrf.mxu0  ;;  %v1055_v4 = vpop.f32.mrf.mxu1 }
 0x124   :  { %v1056_v5 = vpop.f32.mrf.mxu1 }
 0x15c   :  { %v1092_v6 = vpop.f32.mrf.mxu0 }
 0x15d   :  { %v1093_v12 = vadd.f32 %v1092_v6, %v1052_v62 }
 0x15e   :  { %v1094_v7 = vpop.f32.mrf.mxu0  ;;  %v1133_v8 = vpop.f32.mrf.mxu1 }
 0x15f   :  { %v1095_v13 = vadd.f32 %v1094_v7, %v1054_v1  ;;  %v1134_v16 = vadd.f32 %v1133_v8, %v1093_v12 }
 0x160   :  { %v1096_v9 = vpop.f32.mrf.mxu0  ;;  %v1135_v3 = vpop.f32.mrf.mxu1 }
 0x161   :  { %v1136_v18 = vadd.f32 %v1135_v3, %v1095_v13 }
 0x162   :  { %v1097_v10 = vpop.f32.mrf.mxu0  ;;  %v1137_v11 = vpop.f32.mrf.mxu1 }
 0x164   :  { %v1138_v45 = vpop.f32.mrf.mxu1 }
 0x17c   :  { %v1174_v17 = vpop.f32.mrf.mxu0 }
 0x17d   :  { %v1175_v19 = vadd.f32 %v1174_v17, %v1134_v16 }
 0x17e   :  { %v1176_v21 = vpop.f32.mrf.mxu0 }
 0x17f   :  { %v1177_v22 = vadd.f32 %v1176_v21, %v1136_v18  ;;  %v1181_v24 = vmax.f32 %v1175_v19, 0.0 }
 0x180   :  { %v1178_v23 = vpop.f32.mrf.mxu0 }
 0x181   :  { %v1182_v25 = vmax.f32 %v1177_v22, 0.0 }
 0x182   :  { %v1179_v27 = vpop.f32.mrf.mxu0 }
 0x183   :  { %v1185_v28 = vcombine.low %v1181_v24, %v1182_v25 }
 0x185   :  { %v1192_v29 = vrot.slane %v1185_v28, %v1191_v26 }
 0x187   :  { %v1199_v30 = vrot.slane %v1192_v29, %v1191_v26 }
 0x189   :  { %1205 = vst.msk [vmem:[#allocation7] sm:$0x3] %vm1203_vm0, %v1199_v30 }
 0x18a   :  { %1641 = shalt.err (!%p1638_p0)
}
 0x18b   :  { %1215 = dma.vmem_to_hbm [thread:$0]  %s1213_s25, 32, %s1729_s3, [#allocation4]  }
 0x18c   :  { %1654 = dma.done.wait [#allocation4], 32  }
 0x18d   :  { %1655 = vsyncadd [#allocation4], 4294967264 }
 0x18e   :  { %1219 = vsyncpa [#allocation3], 1 }
 0x18f   :  { %1220 = vsyncpa [#allocation6], 1 }
 0x190   :  { %1221 = vsyncpa [#allocation4], 1 }

</bundles_post_ra>
